<compile_context>
chip_gen: v7x
topology: tpu7x:2x2x1
jax: 0.10.0
libtpu: 0.0.40
codegen_flags: <defaults>
</compile_context>

<pallas_src>
import functools

import jax
import jax.numpy as jnp
from jax.experimental import pallas as pl
from jax.experimental.pallas import tpu as pltpu

_LANE = 128     # f32 lane width
_SUBLANE = 8    # f32 sublane count


def _round_up(n, m):
    return ((n + m - 1) // m) * m


def _pad2d(a, rows, cols):
    return jnp.pad(a, ((0, rows - a.shape[0]), (0, cols - a.shape[1])))


def _policy_kernel(x_ref, w1_ref, b1_ref, w2_ref, b2_ref, wh_ref, bh_ref,
                   out_ref, *, action_dims):
    x = x_ref[...]

    # shared_net: Linear -> ReLU -> Linear -> ReLU (each a single MXU tile).
    h = jnp.dot(x, w1_ref[...], preferred_element_type=jnp.float32) + b1_ref[...]
    h = jnp.maximum(h, 0.0)
    h = jnp.dot(h, w2_ref[...], preferred_element_type=jnp.float32) + b2_ref[...]
    h = jnp.maximum(h, 0.0)

    # Fused heads: one matmul yields [mean | std_logits | zero-pad] lanes.
    z = jnp.dot(h, wh_ref[...], preferred_element_type=jnp.float32) + bh_ref[...]

    # Numerically stable softplus, applied only to the stddev lanes.
    softplus = jnp.maximum(z, 0.0) + jnp.log1p(jnp.exp(-jnp.abs(z)))
    col = jax.lax.broadcasted_iota(jnp.int32, z.shape, 1)
    is_std = jnp.logical_and(col >= action_dims, col < 2 * action_dims)

    # Single lane-dense (TB, 128) unmasked store per grid step.
    out_ref[...] = jnp.where(is_std, softplus, z).astype(out_ref.dtype)


def prepare_padded_params(params):
    """Concat the two heads and pad weights to hardware granules.

    Layer-1 rows (the K dim fed by x) are padded only to the 8-row sublane
    granule, not to 128 lanes.  Hidden / head widths are padded to 128 lanes.
    Weights are constant, so this runs once outside the hot path."""
    obs_dims, hidden_dims = params["w1"].shape
    action_dims = params["wm"].shape[1]

    op = _round_up(obs_dims, _SUBLANE)          # 8, not 128
    hp = _round_up(hidden_dims, _LANE)
    head_p = _round_up(2 * action_dims, _LANE)

    w_heads = jnp.concatenate([params["wm"], params["ws"]], axis=1)
    b_heads = jnp.concatenate([params["bm"], params["bs"]], axis=1)

    return dict(
        w1=_pad2d(params["w1"], op, hp),
        b1=_pad2d(params["b1"], 1, hp),
        w2=_pad2d(params["w2"], hp, hp),
        b2=_pad2d(params["b2"], 1, hp),
        wh=_pad2d(w_heads, hp, head_p),
        bh=_pad2d(b_heads, 1, head_p),
    )


@functools.partial(jax.jit, static_argnames=("action_dims", "tb"))
def policy_network_forward(x, padded, *, action_dims, tb=512):
    """x: [B, obs_dims] float.  padded: output of prepare_padded_params."""
    B, obs_in = x.shape
    op, hp = padded["w1"].shape
    head_p = padded["wh"].shape[1]

    x = x.astype(jnp.float32)
    if obs_in != op:
        # Only taken when obs_dims is not already a sublane multiple.
        x = jnp.pad(x, ((0, 0), (0, op - obs_in)))

    # Batch tile: cap at `tb` rows; shrink to the sublane granule for tiny B.
    TB = min(tb, _round_up(B, _SUBLANE))
    grid = (pl.cdiv(B, TB),)

    const = lambda a: pl.BlockSpec(a.shape, lambda i: (0,) * a.ndim)

    flops = 2 * B * (op * hp + hp * hp + hp * head_p)
    bytes_accessed = 4 * (B * op + op * hp + hp + hp * hp + hp
                          + hp * head_p + head_p + B * head_p)
    transcendentals = 2 * B * head_p  # exp + log1p per output lane

    out = pl.pallas_call(
        functools.partial(_policy_kernel, action_dims=action_dims),
        out_shape=jax.ShapeDtypeStruct((B, head_p), jnp.float32),
        grid=grid,
        in_specs=[
            pl.BlockSpec((TB, op), lambda i: (i, 0)),       # x: tiled over batch
            const(padded["w1"]), const(padded["b1"]),       # weights: VMEM-resident
            const(padded["w2"]), const(padded["b2"]),
            const(padded["wh"]), const(padded["bh"]),
        ],
        out_specs=pl.BlockSpec((TB, head_p), lambda i: (i, 0)),
        compiler_params=pltpu.CompilerParams(
            dimension_semantics=("parallel",)),             # v7x dual-TC sharding
        cost_estimate=pl.CostEstimate(
            flops=flops, transcendentals=transcendentals,
            bytes_accessed=bytes_accessed),
    )(x, padded["w1"], padded["b1"], padded["w2"], padded["b2"],
      padded["wh"], padded["bh"])

    mean = out[:, :action_dims]
    std = out[:, action_dims:2 * action_dims]
    return mean, std


def init_params(key, obs_dims, hidden_dims, action_dims):
    """Deterministic synthetic init (uniform, PyTorch-Linear-style bounds).

    Weights are stored [in_features, out_features] (transpose of nn.Linear)."""
    ks = jax.random.split(key, 8)

    def linear(kw, kb, fan_in, fan_out):
        bound = 1.0 / jnp.sqrt(float(fan_in))
        w = jax.random.uniform(kw, (fan_in, fan_out), jnp.float32, -bound, bound)
        b = jax.random.uniform(kb, (1, fan_out), jnp.float32, -bound, bound)
        return w, b

    w1, b1 = linear(ks[0], ks[1], obs_dims, hidden_dims)
    w2, b2 = linear(ks[2], ks[3], hidden_dims, hidden_dims)
    wm, bm = linear(ks[4], ks[5], hidden_dims, action_dims)
    ws, bs = linear(ks[6], ks[7], hidden_dims, action_dims)
    return dict(w1=w1, b1=b1, w2=w2, b2=b2, wm=wm, bm=bm, ws=ws, bs=bs)


def _reference(x, p):
    h = jnp.maximum(x @ p["w1"] + p["b1"], 0.0)
    h = jnp.maximum(h @ p["w2"] + p["b2"], 0.0)
    mean = h @ p["wm"] + p["bm"]
    std = jax.nn.softplus(h @ p["ws"] + p["bs"])   # == log(1+exp(.)) stably
    return mean, std


if __name__ == "__main__":
    obs_dims, hidden_dims, action_dims = 8, 32, 4
    batch = 2

    key = jax.random.PRNGKey(0)
    kx, kp = jax.random.split(key)
    x = jax.random.normal(kx, (batch, obs_dims), jnp.float32)
    params = init_params(kp, obs_dims, hidden_dims, action_dims)
    padded = prepare_padded_params(params)

    mean, std = policy_network_forward(x, padded, action_dims=action_dims)
    jax.block_until_ready((mean, std))

    ref_mean, ref_std = _reference(x, params)
    assert mean.shape == (batch, action_dims)
    assert std.shape == (batch, action_dims)
    assert jnp.allclose(mean, ref_mean, atol=1e-5, rtol=1e-5)
    assert jnp.allclose(std, ref_std, atol=1e-5, rtol=1e-5)
    assert bool(jnp.all(std > 0.0))

    print("KERNEL_OK")
</pallas_src>

<mosaic_0001>
module attributes {stable_mosaic.version = 11 : i64} {
  func.func @_policy_kernel(%arg0: i32, %arg1: memref<8x8xf32, #tpu.memory_space<vmem>>, %arg2: memref<8x128xf32, #tpu.memory_space<vmem>>, %arg3: memref<1x128xf32, #tpu.memory_space<vmem>>, %arg4: memref<128x128xf32, #tpu.memory_space<vmem>>, %arg5: memref<1x128xf32, #tpu.memory_space<vmem>>, %arg6: memref<128x128xf32, #tpu.memory_space<vmem>>, %arg7: memref<1x128xf32, #tpu.memory_space<vmem>>, %arg8: memref<8x128xf32, #tpu.memory_space<vmem>>) attributes {dimension_semantics = [#tpu.dimension_semantics<parallel>], iteration_bounds = array<i64: 1>, scalar_prefetch = 0 : i64, scratch_operands = 0 : i64, tpu.core_type = #tpu.core_type<tc>, window_params = [{transform_indices = @transform_0, window_bounds = array<i64: 8, 8>}, {pipeline_mode = #tpu.pipeline_mode<synchronous>, transform_indices = @transform_1, window_bounds = array<i64: 8, 128>}, {pipeline_mode = #tpu.pipeline_mode<synchronous>, transform_indices = @transform_2, window_bounds = array<i64: 1, 128>}, {pipeline_mode = #tpu.pipeline_mode<synchronous>, transform_indices = @transform_3, window_bounds = array<i64: 128, 128>}, {pipeline_mode = #tpu.pipeline_mode<synchronous>, transform_indices = @transform_4, window_bounds = array<i64: 1, 128>}, {pipeline_mode = #tpu.pipeline_mode<synchronous>, transform_indices = @transform_5, window_bounds = array<i64: 128, 128>}, {pipeline_mode = #tpu.pipeline_mode<synchronous>, transform_indices = @transform_6, window_bounds = array<i64: 1, 128>}, {transform_indices = @transform_7, window_bounds = array<i64: 8, 128>}]} {
    %c0 = arith.constant 0 : index
    %c0_0 = arith.constant 0 : index
    %0 = vector.load %arg1[%c0, %c0_0] : memref<8x8xf32, #tpu.memory_space<vmem>>, vector<8x8xf32>
    %c0_1 = arith.constant 0 : index
    %c0_2 = arith.constant 0 : index
    %1 = vector.load %arg2[%c0_1, %c0_2] : memref<8x128xf32, #tpu.memory_space<vmem>>, vector<8x128xf32>
    %cst = arith.constant dense<0.000000e+00> : vector<8x128xf32>
    %2 = tpu.matmul %0, %1, %cst {dimension_numbers = #tpu.dot_dimension_numbers<[1], [0], [0], [1], [0, 0, 1, 1], [], []>} : vector<8x8xf32>, vector<8x128xf32>, vector<8x128xf32> -> vector<8x128xf32>
    %c0_3 = arith.constant 0 : index
    %c0_4 = arith.constant 0 : index
    %3 = vector.load %arg3[%c0_3, %c0_4] : memref<1x128xf32, #tpu.memory_space<vmem>>, vector<1x128xf32>
    %4 = vector.broadcast %3 : vector<1x128xf32> to vector<8x128xf32>
    %5 = arith.addf %2, %4 : vector<8x128xf32>
    %cst_5 = arith.constant 0.000000e+00 : f32
    %6 = vector.broadcast %cst_5 : f32 to vector<8x128xf32>
    %7 = arith.maximumf %5, %6 : vector<8x128xf32>
    %c0_6 = arith.constant 0 : index
    %c0_7 = arith.constant 0 : index
    %8 = vector.load %arg4[%c0_6, %c0_7] : memref<128x128xf32, #tpu.memory_space<vmem>>, vector<128x128xf32>
    %cst_8 = arith.constant dense<0.000000e+00> : vector<8x128xf32>
    %9 = tpu.matmul %7, %8, %cst_8 {dimension_numbers = #tpu.dot_dimension_numbers<[1], [0], [0], [1], [0, 0, 1, 1], [], []>} : vector<8x128xf32>, vector<128x128xf32>, vector<8x128xf32> -> vector<8x128xf32>
    %c0_9 = arith.constant 0 : index
    %c0_10 = arith.constant 0 : index
    %10 = vector.load %arg5[%c0_9, %c0_10] : memref<1x128xf32, #tpu.memory_space<vmem>>, vector<1x128xf32>
    %11 = vector.broadcast %10 : vector<1x128xf32> to vector<8x128xf32>
    %12 = arith.addf %9, %11 : vector<8x128xf32>
    %cst_11 = arith.constant 0.000000e+00 : f32
    %13 = vector.broadcast %cst_11 : f32 to vector<8x128xf32>
    %14 = arith.maximumf %12, %13 : vector<8x128xf32>
    %c0_12 = arith.constant 0 : index
    %c0_13 = arith.constant 0 : index
    %15 = vector.load %arg6[%c0_12, %c0_13] : memref<128x128xf32, #tpu.memory_space<vmem>>, vector<128x128xf32>
    %cst_14 = arith.constant dense<0.000000e+00> : vector<8x128xf32>
    %16 = tpu.matmul %14, %15, %cst_14 {dimension_numbers = #tpu.dot_dimension_numbers<[1], [0], [0], [1], [0, 0, 1, 1], [], []>} : vector<8x128xf32>, vector<128x128xf32>, vector<8x128xf32> -> vector<8x128xf32>
    %c0_15 = arith.constant 0 : index
    %c0_16 = arith.constant 0 : index
    %17 = vector.load %arg7[%c0_15, %c0_16] : memref<1x128xf32, #tpu.memory_space<vmem>>, vector<1x128xf32>
    %18 = vector.broadcast %17 : vector<1x128xf32> to vector<8x128xf32>
    %19 = arith.addf %16, %18 : vector<8x128xf32>
    %cst_17 = arith.constant 0.000000e+00 : f32
    %20 = vector.broadcast %cst_17 : f32 to vector<8x128xf32>
    %21 = arith.maximumf %19, %20 : vector<8x128xf32>
    %22 = math.absf %19 : vector<8x128xf32>
    %cst_18 = arith.constant 0.000000e+00 : f32
    %23 = vector.broadcast %cst_18 : f32 to vector<8x128xf32>
    %24 = arith.subf %23, %22 : vector<8x128xf32>
    %25 = math.exp %24 : vector<8x128xf32>
    %26 = math.log1p %25 : vector<8x128xf32>
    %27 = arith.addf %21, %26 : vector<8x128xf32>
    %28 = tpu.iota {dimensions = array<i32: 1>} : vector<8x128xi32>
    %c4_i32 = arith.constant 4 : i32
    %29 = vector.broadcast %c4_i32 : i32 to vector<8x128xi32>
    %30 = arith.cmpi sge, %28, %29 : vector<8x128xi32>
    %c8_i32 = arith.constant 8 : i32
    %31 = vector.broadcast %c8_i32 : i32 to vector<8x128xi32>
    %32 = arith.cmpi slt, %28, %31 : vector<8x128xi32>
    %33 = arith.andi %30, %32 : vector<8x128xi1>
    %34 = arith.select %33, %27, %19 : vector<8x128xi1>, vector<8x128xf32>
    %c0_19 = arith.constant 0 : index
    %c0_20 = arith.constant 0 : index
    %35 = vector.load %arg8[%c0_19, %c0_20] : memref<8x128xf32, #tpu.memory_space<vmem>>, vector<8x128xf32>
    tpu.vector_store %arg8[%c0_19, %c0_20], %34 {strides = array<i32>} : memref<8x128xf32, #tpu.memory_space<vmem>>, vector<8x128xf32>,
    return
  }
  func.func @transform_0(%arg0: i32) -> (i32, i32) {
    %c0_i32 = arith.constant 0 : i32
    %c0_i32_0 = arith.constant 0 : i32
    return %arg0, %c0_i32 : i32, i32
  }
  func.func @transform_1(%arg0: i32) -> (i32, i32) {
    %c0_i32 = arith.constant 0 : i32
    %c0_i32_0 = arith.constant 0 : i32
    %c0_i32_1 = arith.constant 0 : i32
    return %c0_i32, %c0_i32_0 : i32, i32
  }
  func.func @transform_2(%arg0: i32) -> (i32, i32) {
    %c0_i32 = arith.constant 0 : i32
    %c0_i32_0 = arith.constant 0 : i32
    %c0_i32_1 = arith.constant 0 : i32
    return %c0_i32, %c0_i32_0 : i32, i32
  }
  func.func @transform_3(%arg0: i32) -> (i32, i32) {
    %c0_i32 = arith.constant 0 : i32
    %c0_i32_0 = arith.constant 0 : i32
    %c0_i32_1 = arith.constant 0 : i32
    return %c0_i32, %c0_i32_0 : i32, i32
  }
  func.func @transform_4(%arg0: i32) -> (i32, i32) {
    %c0_i32 = arith.constant 0 : i32
    %c0_i32_0 = arith.constant 0 : i32
    %c0_i32_1 = arith.constant 0 : i32
    return %c0_i32, %c0_i32_0 : i32, i32
  }
  func.func @transform_5(%arg0: i32) -> (i32, i32) {
    %c0_i32 = arith.constant 0 : i32
    %c0_i32_0 = arith.constant 0 : i32
    %c0_i32_1 = arith.constant 0 : i32
    return %c0_i32, %c0_i32_0 : i32, i32
  }
  func.func @transform_6(%arg0: i32) -> (i32, i32) {
    %c0_i32 = arith.constant 0 : i32
    %c0_i32_0 = arith.constant 0 : i32
    %c0_i32_1 = arith.constant 0 : i32
    return %c0_i32, %c0_i32_0 : i32, i32
  }
  func.func @transform_7(%arg0: i32) -> (i32, i32) {
    %c0_i32 = arith.constant 0 : i32
    %c0_i32_0 = arith.constant 0 : i32
    return %arg0, %c0_i32 : i32, i32
  }
}

</mosaic_0001>

<bundles_post_ra>
// kernel: policy_network_forward.1
= control target key start
LH: loop header
LB: loop body
LE: loop exit
PB: predicated region body
PF: predicated region fallthrough
CT: control target
= control target key end

     0   :  { %12 = vsyncpa [#allocation3], 0  ;;  %s774_s0 = inlined_call_operand.hbm [shape: f32[2,8], index: 0, kind: input, shape index: {}]   ;;  %s775_s1 = inlined_call_operand.vmem [shape: f32[8,128], index: 1, kind: input, shape index: {}]   ;;  %s776_s2 = inlined_call_operand.vmem [shape: f32[1,128], index: 2, kind: input, shape index: {}]   ;;  %s777_s3 = inlined_call_operand.hbm [shape: f32[128,128], index: 3, kind: input, shape index: {}]   ;;  %s778_s4 = inlined_call_operand.vmem [shape: f32[1,128], index: 4, kind: input, shape index: {}]   ;;  %s779_s5 = inlined_call_operand.hbm [shape: f32[128,128], index: 5, kind: input, shape index: {}]   ;;  %s780_s6 = inlined_call_operand.vmem [shape: f32[1,128], index: 6, kind: input, shape index: {}]   ;;  %s781_s7 = inlined_call_operand.vmem [shape: f32[2,128], index: 7, kind: output, shape index: {}]  }
   0x1   :  { %13 = vsyncpa [#allocation5], 0 }
   0x2   :  { %18 = vsyncadd [#allocation3], 96  ;;  %s648_s24 = smov [#allocation4]   ;;  %s578_s28 = scalar_lea.hbm %s777_s3, 2048 }
   0x3   :  { %s35_s25 = sshll.u32 %s648_s24, 4  ;;  %p579_p0 = scmp.ne.s32.totalorder %s777_s3, %s578_s28  ;;  %s36_s25 = int_to_ptr.vmem [resolvable:$true] %s35_s25 }
   0x4   :  { %p582_p1 = scmp.lt.u32.totalorder %s578_s28, %s777_s3 }
   0x6   :  { %p584_p2 = pnand %p582_p1, %p579_p0 }
   0x8   :  { %587 = shalt.err (!%p584_p2)
}
   0x9   :  { %s588_s10 = scalar_lea.vmem %s36_s25, 2048  ;;  %p593_p4 = scmp.lt.s32.totalorder %s36_s25, %s36_s25 }
   0xa   :  { %p589_p3 = scmp.ne.s32.totalorder %s36_s25, %s588_s10  ;;  %p594_p5 = scmp.lt.s32.totalorder %s588_s10, %s588_s10 }
   0xc   :  { %p595_p6 = por %p594_p5, %p593_p4 }
   0xe   :  { %p596_p7 = pnand %p595_p6, %p589_p3 }
  0x10   :  { %599 = shalt.err (!%p596_p7)
}
  0x11   :  { %s649_s11 = smov 128   ;;  %s650_s12 = smov 8  }
  0x12   :  { %41 = dma.hbm_to_vmem [thread:$0]  %s777_s3, 2048, %s36_s25, [#allocation5], %s649_s11, %s649_s11, %s650_s12  }
  0x13   :  { %s651_s15 = smov [#allocation2]   ;;  %s600_s19 = scalar_lea.hbm %s774_s0, 32 }
  0x14   :  { %s19_s16 = sshll.u32 %s651_s15, 4  ;;  %p601_p8 = scmp.ne.s32.totalorder %s774_s0, %s600_s19  ;;  %s20_s16 = int_to_ptr.vmem [resolvable:$true] %s19_s16 }
  0x15   :  { %p604_p9 = scmp.lt.u32.totalorder %s600_s19, %s774_s0 }
  0x17   :  { %p606_p10 = pnand %p604_p9, %p601_p8 }
  0x19   :  { %609 = shalt.err (!%p606_p10)
}
  0x1a   :  { %s610_s24 = scalar_lea.vmem %s20_s16, 32  ;;  %s614_s3 = scalar_lea.vmem %s20_s16, 128 }
  0x1b   :  { %p611_p11 = scmp.ne.s32.totalorder %s20_s16, %s610_s24  ;;  %p615_p12 = scmp.lt.s32.totalorder %s20_s16, %s20_s16 }
  0x1c   :  { %p616_p13 = scmp.lt.s32.totalorder %s614_s3, %s610_s24 }
  0x1e   :  { %p617_p0 = por %p616_p13, %p615_p12 }
  0x20   :  { %p618_p1 = pnand %p617_p0, %p611_p11 }
  0x22   :  { %621 = shalt.err (!%p618_p1)
}
  0x23   :  { %s652_s25 = smov 32   ;;  %s653_s26 = smov 2  }
  0x24   :  { %25 = dma.hbm_to_vmem [thread:$0]  %s774_s0, 32, %s20_s16, [#allocation3], %s652_s25, %s652_s25, %s653_s26  }
  0x25   :  { %s654_s29 = smov [#allocation6]   ;;  %s622_s10 = scalar_lea.hbm %s779_s5, 2048 }
  0x26   :  { %s49_s30 = sshll.u32 %s654_s29, 4  ;;  %p623_p2 = scmp.ne.s32.totalorder %s779_s5, %s622_s10  ;;  %s50_s30 = int_to_ptr.vmem [resolvable:$true] %s49_s30 }
  0x27   :  { %p626_p3 = scmp.lt.u32.totalorder %s622_s10, %s779_s5 }
  0x29   :  { %p628_p4 = pnand %p626_p3, %p623_p2 }
  0x2b   :  { %631 = shalt.err (!%p628_p4)
}
  0x2c   :  { %s632_s18 = scalar_lea.vmem %s50_s30, 2048  ;;  %p637_p6 = scmp.lt.s32.totalorder %s50_s30, %s50_s30 }
  0x2d   :  { %p633_p5 = scmp.ne.s32.totalorder %s50_s30, %s632_s18  ;;  %p638_p7 = scmp.lt.s32.totalorder %s632_s18, %s632_s18 }
  0x2f   :  { %p639_p8 = por %p638_p7, %p637_p6 }
  0x31   :  { %p640_p9 = pnand %p639_p8, %p633_p5 }
  0x33   :  { %643 = shalt.err (!%p640_p9)
}
  0x34   :  { %55 = dma.hbm_to_vmem [thread:$0]  %s779_s5, 2048, %s50_s30, [#allocation5], %s649_s11, %s649_s11, %s650_s12  }
  0x35   :  { %644 = dma.done.wait [#allocation3], 128  }
  0x36   :  { %645 = vsyncadd [#allocation3], 4294967168 }
  0x37   :  { %646 = dma.done.wait [#allocation5], 4096  }
  0x38   :  { %647 = vsyncadd [#allocation5], 4294963200  ;;  %v655_v0 = vmov 0.0   ;;  %vm656_vm0 = vmmov 0   ;;  %v657_v1 = vmov 0.0|0.0   ;;  %vm76_vm1 = vcmask 64512  }
  0x39   :  { %441 = vmatprep.subr.mxu0 %v655_v0  ;;  %443 = vmatprep.mubr.msk.f32.mxu0 %vm656_vm0, %v655_v0  ;;  %v68_v2 = vld [vmem:[%s775_s1] sm:$0xff]  ;;  %v67_v3 = vld [vmem:[#allocation2] sm:$0xff]  ;;  %v151_v4 = vld [vmem:[#allocation4] sm:$0xff] }
  0x3a   :  { %516 = vmatprep.subr.bf16.mxu1 %v657_v1  ;;  %478 = vmatprep.mubr.msk.f32.mxu1 %vm656_vm0, %v655_v0  ;;  %v152_v5 = vld [vmem:[#allocation4 + $0x8] sm:$0xff]  ;;  %v153_v6 = vld [vmem:[#allocation4 + $0x10] sm:$0xff]  ;;  %v154_v7 = vld [vmem:[#allocation4 + $0x18] sm:$0xff] }
  0x3b   :  { %442 = vmatpush3.msra.mxu0 %v68_v2  ;;  %v517_v8 = vpack.c.bf16 %v152_v5, %v151_v4  ;;  %v520_v9 = vpack.c.bf16 %v154_v7, %v153_v6  ;;  %v155_v10 = vld [vmem:[#allocation4 + $0x20] sm:$0xff]  ;;  %v156_v11 = vld [vmem:[#allocation4 + $0x28] sm:$0xff]  ;;  %v157_v13 = vld [vmem:[#allocation4 + $0x30] sm:$0xff]  ;;  %v353_v7 = vlaneseq }
  0x3c   :  { %444 = vmatmul.mubr.msk.f32.vlgmr.msra.gmra.mrb[0].mxu0 %vm76_vm1, %v67_v3  ;;  %540 = vmatprep.subr.bf16.mxu0 %v657_v1  ;;  %v523_v12 = vpack.c.bf16 %v156_v11, %v155_v10  ;;  %v158_v14 = vld [vmem:[#allocation4 + $0x38] sm:$0xff]  ;;  %v159_v16 = vld [vmem:[#allocation4 + $0x40] sm:$0xff]  ;;  %v160_v17 = vld [vmem:[#allocation4 + $0x48] sm:$0xff] }
  0x3d   :  { %513 = vmatprep.mubr.msk.f32.mxu0 %vm656_vm0, %v655_v0  ;;  %518 = vmatpush3.bf16.msra.mxu1 %v517_v8  ;;  %v526_v15 = vpack.c.bf16 %v158_v14, %v157_v13  ;;  %v529_v18 = vpack.c.bf16 %v160_v17, %v159_v16  ;;  %v161_v19 = vld [vmem:[#allocation4 + $0x50] sm:$0xff]  ;;  %v162_v20 = vld [vmem:[#allocation4 + $0x58] sm:$0xff]  ;;  %v163_v22 = vld [vmem:[#allocation4 + $0x60] sm:$0xff] }
  0x3e   :  { %519 = vmatprep.subr.bf16.mxu1 %v657_v1  ;;  %v532_v21 = vpack.c.bf16 %v162_v20, %v161_v19  ;;  %v164_v23 = vld [vmem:[#allocation4 + $0x68] sm:$0xff]  ;;  %v165_v25 = vld [vmem:[#allocation4 + $0x70] sm:$0xff]  ;;  %v166_v26 = vld [vmem:[#allocation4 + $0x78] sm:$0xff] }
  0x3f   :  { %v535_v24 = vpack.c.bf16 %v164_v23, %v163_v22  ;;  %v538_v27 = vpack.c.bf16 %v166_v26, %v165_v25  ;;  %v245_v28 = vld [vmem:[#allocation6] sm:$0xff]  ;;  %v246_v29 = vld [vmem:[#allocation6 + $0x8] sm:$0xff]  ;;  %v247_v30 = vld [vmem:[#allocation6 + $0x10] sm:$0xff] }
  0x40   :  { %v541_v31 = vpack.c.bf16 %v246_v29, %v245_v28  ;;  %v248_v32 = vld [vmem:[#allocation6 + $0x18] sm:$0xff]  ;;  %v249_v34 = vld [vmem:[#allocation6 + $0x20] sm:$0xff]  ;;  %v250_v35 = vld [vmem:[#allocation6 + $0x28] sm:$0xff] }
  0x41   :  { %521 = vmatpush3.bf16.msra.mxu1 %v520_v9  ;;  %v544_v33 = vpack.c.bf16 %v248_v32, %v247_v30  ;;  %v547_v36 = vpack.c.bf16 %v250_v35, %v249_v34  ;;  %v251_v37 = vld [vmem:[#allocation6 + $0x30] sm:$0xff]  ;;  %v252_v38 = vld [vmem:[#allocation6 + $0x38] sm:$0xff]  ;;  %v253_v40 = vld [vmem:[#allocation6 + $0x40] sm:$0xff]  ;;  %v354_v9 = vand.u32 127, %v353_v7 }
  0x42   :  { %522 = vmatprep.subr.bf16.mxu1 %v657_v1  ;;  %542 = vmatpush3.bf16.msra.mxu0 %v541_v31  ;;  %v550_v39 = vpack.c.bf16 %v252_v38, %v251_v37  ;;  %v254_v41 = vld [vmem:[#allocation6 + $0x48] sm:$0xff]  ;;  %v255_v43 = vld [vmem:[#allocation6 + $0x50] sm:$0xff]  ;;  %v256_v44 = vld [vmem:[#allocation6 + $0x58] sm:$0xff] }
  0x43   :  { %543 = vmatprep.subr.bf16.mxu0 %v657_v1  ;;  %v553_v42 = vpack.c.bf16 %v254_v41, %v253_v40  ;;  %v556_v45 = vpack.c.bf16 %v256_v44, %v255_v43  ;;  %v257_v46 = vld [vmem:[#allocation6 + $0x60] sm:$0xff]  ;;  %v258_v47 = vld [vmem:[#allocation6 + $0x68] sm:$0xff]  ;;  %v259_v54 = vld [vmem:[#allocation6 + $0x70] sm:$0xff]  ;;  %vm355_vm2 = vcmp.ge.s32.totalorder %v354_v9, 4  ;;  %vm356_vm3 = vcmp.lt.s32.totalorder %v354_v9, 8 }
  0x44   :  { %v559_v48 = vpack.c.bf16 %v258_v47, %v257_v46  ;;  %v401_v49 = vld [vmem:[%s776_s2] ss:$0 sm:$0xff]  ;;  %v260_v55 = vld [vmem:[#allocation6 + $0x78] sm:$0xff]  ;;  %vm357_vm5 = vmand %vm355_vm2, %vm356_vm3 }
  0x45   :  { %524 = vmatpush3.bf16.msra.mxu1 %v523_v12  ;;  %v562_v56 = vpack.c.bf16 %v260_v55, %v259_v54  ;;  %v403_v57 = vld [vmem:[%s778_s4] ss:$0 sm:$0xff] }
  0x46   :  { %525 = vmatprep.subr.bf16.mxu1 %v657_v1  ;;  %545 = vmatpush3.bf16.msra.mxu0 %v544_v33  ;;  %v404_v62 = vld [vmem:[%s780_s6] ss:$0 sm:$0xff] }
  0x47   :  { %546 = vmatprep.subr.bf16.mxu0 %v657_v1 }
  0x49   :  { %527 = vmatpush3.bf16.msra.mxu1 %v526_v15 }
  0x4a   :  { %528 = vmatprep.subr.bf16.mxu1 %v657_v1  ;;  %548 = vmatpush3.bf16.msra.mxu0 %v547_v36 }
  0x4b   :  { %549 = vmatprep.subr.bf16.mxu0 %v657_v1 }
  0x4d   :  { %530 = vmatpush3.bf16.msra.mxu1 %v529_v18 }
  0x4e   :  { %531 = vmatprep.subr.bf16.mxu1 %v657_v1  ;;  %551 = vmatpush3.bf16.msra.mxu0 %v550_v39 }
  0x4f   :  { %552 = vmatprep.subr.bf16.mxu0 %v657_v1 }
  0x51   :  { %533 = vmatpush3.bf16.msra.mxu1 %v532_v21 }
  0x52   :  { %534 = vmatprep.subr.bf16.mxu1 %v657_v1  ;;  %554 = vmatpush3.bf16.msra.mxu0 %v553_v42 }
  0x53   :  { %555 = vmatprep.subr.bf16.mxu0 %v657_v1 }
  0x55   :  { %536 = vmatpush3.bf16.msra.mxu1 %v535_v24 }
  0x56   :  { %537 = vmatprep.subr.bf16.mxu1 %v657_v1  ;;  %557 = vmatpush3.bf16.msra.mxu0 %v556_v45 }
  0x57   :  { %558 = vmatprep.subr.bf16.mxu0 %v657_v1 }
  0x59   :  { %539 = vmatpush3.bf16.msra.mxu1 %v538_v27 }
  0x5a   :  { %560 = vmatpush3.bf16.msra.mxu0 %v559_v48 }
  0x5b   :  { %561 = vmatprep.subr.bf16.mxu0 %v657_v1 }
  0x5e   :  { %563 = vmatpush3.bf16.msra.mxu0 %v562_v56 }
 0x10f   :  { %v146_v50 = vpop.f32.mrb[0].mxu0 }
 0x110   :  { %v147_v51 = vadd.f32 %v401_v49, %v146_v50  ;;  %v445_v52 = vpop.f32.mrb[1].mxu0 }
 0x112   :  { %v150_v53 = vmax.f32 %v147_v51, 0.0 }
 0x114   :  { %479 = vmatmul.mubr.f32.vlgmr.msra.gmra.mrb[0].mxu1 %v150_v53 }
 0x1e7   :  { %v240_v58 = vpop.f32.mrb[0].mxu1 }
 0x1e8   :  { %v241_v59 = vadd.f32 %v403_v57, %v240_v58  ;;  %v480_v60 = vpop.f32.mrb[1].mxu1 }
 0x1ea   :  { %v244_v61 = vmax.f32 %v241_v59, 0.0 }
 0x1ec   :  { %514 = vmatmul.mubr.f32.vlgmr.msra.gmra.mrb[2].mxu0 %v244_v61 }
 0x2bf   :  { %v334_v63 = vpop.f32.mrb[2].mxu0 }
 0x2c0   :  { %v335_v0 = vadd.f32 %v404_v62, %v334_v63  ;;  %v515_v1 = vpop.f32.mrb[3].mxu0 }
 0x2c2   :  { %v339_v2 = vand.u32 2147483647, %v335_v0  ;;  %v338_v15 = vmax.f32 %v335_v0, 0.0 }
 0x2c4   :  { %v340_v3 = vsub.f32 0.0, %v339_v2 }
 0x2c6   :  { %v341_v4 = vmul.f32 1.442695, %v340_v3 }
 0x2c8   :  { %574 = vpow2.f32 %v341_v4 }
 0x2d2   :  { %v575_v5 = vpop.eup %574 }
 0x2d3   :  { %v343_v6 = vadd.f32 1.0, %v575_v5  ;;  %v346_v8 = vmul.f32 -0.5, %v575_v5  ;;  %v349_v11 = vand.u32 2147483647, %v575_v5 }
 0x2d5   :  { %576 = vlog2.f32 %v343_v6  ;;  %v347_v10 = vadd.f32 1.0, %v346_v8  ;;  %vm350_vm4 = vcmp.lt.f32.partialorder %v349_v11, 0.0004427343 }
 0x2d7   :  { %v348_v14 = vmul.f32 %v575_v5, %v347_v10 }
 0x2df   :  { %v577_v12 = vpop.eup %576 }
 0x2e0   :  { %v345_v13 = vmul.f32 0.6931472, %v577_v12 }
 0x2e2   :  { %v351_v16 = vsel %vm350_vm4, %v348_v14, %v345_v13 }
 0x2e3   :  { %v352_v17 = vadd.f32 %v351_v16, %v338_v15 }
 0x2e5   :  { %v358_v18 = vsel %vm357_vm5, %v352_v17, %v335_v0 }
 0x2e6   :  { %359 = vst [vmem:[#allocation7] sm:$0xff] %v358_v18 }
 0x2ed   :  { %v377_v19 = vld [vmem:[#allocation7] sm:$0x3] }
 0x2ee   :  { %378 = vst [vmem:[%s781_s7] sm:$0x3] %v377_v19 }
 0x2ef   :  { %395 = vsyncpa [#allocation3], 1 }
 0x2f0   :  { %396 = vsyncpa [#allocation5], 1 }

</bundles_post_ra>
